<compile_context>
chip_gen: v6e
topology: v6e:2x2x1
jax: 0.10.0
libtpu: 0.0.40
codegen_flags: <defaults>
</compile_context>

<pallas_src>
import jax
import jax.numpy as jnp
from jax.experimental import pallas as pl
from jax.experimental.pallas import tpu as pltpu

IN_DIM = 2
HID_DIM = 16
OUT_DIM = 1

LANE = 128            # lane width
MAX_BATCH_TILE = 1024 # batch elements (lanes) per grid step


def _round_up(x, m):
    return (x + m - 1) // m * m


def mlp_kernel(x_ref, w1_ref, b1_ref, w2_ref, b2_ref, o_ref):
    """One batch tile. x_ref: (IN_DIM, TB), o_ref: (OUT_DIM, TB)."""
    x = x_ref[...]                       # (2, TB)  batch on lanes
    w1 = w1_ref[...]                     # (16, 2)
    # fc1 as VPU broadcast-FMA: h[j, b] = sum_i w1[j, i] * x[i, b]
    # (K=2 is far too small for the MXU; this skips the vmatmul/vpop latency)
    h = w1[:, 0:1] * x[0:1, :] + w1[:, 1:2] * x[1:2, :]      # (16, TB)
    h = jnp.maximum(h + b1_ref[...], 0.0)                    # bias + ReLU (VPU)
    # fc2: weighted sublane reduction over the 16 hidden units (XLU)
    y = jnp.sum(w2_ref[...] * h, axis=0, keepdims=True)      # (1, TB)
    o_ref[...] = jax.nn.sigmoid(y + b2_ref[...])             # sigmoid (EUP)


@jax.jit
def mlp_forward(x, w1, b1_col, w2_col, b2_11):
    """x: (B, IN_DIM) f32 -> (B, OUT_DIM) f32 = sigmoid(relu(x @ W1^T + b1) @ W2^T + b2).

    Params must come from prepare_params() (one-time layout, hoisted out of
    the per-call path).
    """
    B = x.shape[0]
    tb = min(MAX_BATCH_TILE, _round_up(B, LANE))   # batch tile (lanes)
    b_pad = _round_up(B, tb)
    grid = (b_pad // tb,)

    # Lane-dense-in-batch input: (IN_DIM, B_pad); zero-pad only the batch tail.
    x_t = jnp.zeros((IN_DIM, b_pad), jnp.float32).at[:, :B].set(x.T)

    cost = pl.CostEstimate(
        flops=2 * b_pad * (IN_DIM * HID_DIM + HID_DIM * OUT_DIM),
        transcendentals=b_pad * OUT_DIM,
        bytes_accessed=4 * (IN_DIM * b_pad + OUT_DIM * b_pad
                            + HID_DIM * (IN_DIM + 1 + OUT_DIM) + OUT_DIM),
    )

    out_t = pl.pallas_call(
        mlp_kernel,
        out_shape=jax.ShapeDtypeStruct((OUT_DIM, b_pad), jnp.float32),
        grid=grid,
        in_specs=[
            pl.BlockSpec((IN_DIM, tb), lambda i: (0, i)),       # x tile (pipelined)
            pl.BlockSpec((HID_DIM, IN_DIM), lambda i: (0, 0)),  # W1 resident
            pl.BlockSpec((HID_DIM, 1), lambda i: (0, 0)),       # b1 resident
            pl.BlockSpec((HID_DIM, 1), lambda i: (0, 0)),       # W2^T resident
            pl.BlockSpec((1, 1), lambda i: (0, 0)),             # b2 resident
        ],
        out_specs=pl.BlockSpec((OUT_DIM, tb), lambda i: (0, i)),
        compiler_params=pltpu.CompilerParams(
            dimension_semantics=("parallel",),  # megacore-shard batch on v7x
            vmem_limit_bytes=16 << 20,          # tiny footprint; safe on v7x's 64 MiB
        ),
        cost_estimate=cost,
    )(x_t, w1, b1_col, w2_col, b2_11)

    # (1, B_pad) row-major has the same data order as (B_pad, 1); drop padding.
    return out_t.reshape(b_pad, OUT_DIM)[:B]


def prepare_params(w1, b1, w2, b2):
    """One-time re-layout of PyTorch-convention params for the kernel.

    w1: (HID, IN), b1: (HID,), w2: (OUT, HID), b2: (OUT,)
    """
    return (
        jnp.asarray(w1, jnp.float32),                              # (16, 2)
        jnp.asarray(b1, jnp.float32).reshape(HID_DIM, 1),          # (16, 1)
        jnp.asarray(w2, jnp.float32).T.reshape(HID_DIM, OUT_DIM),  # (16, 1) == W2^T
        jnp.asarray(b2, jnp.float32).reshape(1, OUT_DIM),          # (1, 1)
    )


def init_params(key):
    """Deterministic init mimicking PyTorch nn.Linear default (U[-1/sqrt(fan_in), +])."""
    k1, k2, k3, k4 = jax.random.split(key, 4)
    bound1 = 1.0 / jnp.sqrt(IN_DIM)
    bound2 = 1.0 / jnp.sqrt(HID_DIM)
    w1 = jax.random.uniform(k1, (HID_DIM, IN_DIM), jnp.float32, -bound1, bound1)
    b1 = jax.random.uniform(k2, (HID_DIM,), jnp.float32, -bound1, bound1)
    w2 = jax.random.uniform(k3, (OUT_DIM, HID_DIM), jnp.float32, -bound2, bound2)
    b2 = jax.random.uniform(k4, (OUT_DIM,), jnp.float32, -bound2, bound2)
    return w1, b1, w2, b2


if __name__ == "__main__":
    key = jax.random.PRNGKey(0)
    k_x, k_p = jax.random.split(key)

    B = 8
    x = jax.random.normal(k_x, (B, IN_DIM), jnp.float32)
    w1, b1, w2, b2 = init_params(k_p)
    params = prepare_params(w1, b1, w2, b2)   # hoisted out of the hot path

    out = mlp_forward(x, *params)
    out = jax.block_until_ready(out)

    # Pure-JAX reference (PyTorch convention: y = x @ W^T + b)
    ref = jax.nn.sigmoid(jnp.maximum(x @ w1.T + b1, 0.0) @ w2.T + b2)
    assert out.shape == (B, OUT_DIM)
    assert jnp.allclose(out, ref, atol=1e-5, rtol=1e-5)

    print("KERNEL_OK")
</pallas_src>

<mosaic_0001>
module attributes {stable_mosaic.version = 11 : i64} {
  func.func @mlp_kernel(%arg0: i32, %arg1: memref<2x128xf32, #tpu.memory_space<vmem>>, %arg2: memref<16x2xf32, #tpu.memory_space<vmem>>, %arg3: memref<16x1xf32, #tpu.memory_space<vmem>>, %arg4: memref<16x1xf32, #tpu.memory_space<vmem>>, %arg5: memref<1x1xf32, #tpu.memory_space<vmem>>, %arg6: memref<1x128xf32, #tpu.memory_space<vmem>>) attributes {dimension_semantics = [#tpu.dimension_semantics<parallel>], iteration_bounds = array<i64: 1>, scalar_prefetch = 0 : i64, scratch_operands = 0 : i64, tpu.core_type = #tpu.core_type<tc>, window_params = [{transform_indices = @transform_0, window_bounds = array<i64: 2, 128>}, {pipeline_mode = #tpu.pipeline_mode<synchronous>, transform_indices = @transform_1, window_bounds = array<i64: 16, 2>}, {pipeline_mode = #tpu.pipeline_mode<synchronous>, transform_indices = @transform_2, window_bounds = array<i64: 16, 1>}, {pipeline_mode = #tpu.pipeline_mode<synchronous>, transform_indices = @transform_3, window_bounds = array<i64: 16, 1>}, {pipeline_mode = #tpu.pipeline_mode<synchronous>, transform_indices = @transform_4, window_bounds = array<i64: 1, 1>}, {transform_indices = @transform_5, window_bounds = array<i64: 1, 128>}]} {
    %c0 = arith.constant 0 : index
    %c0_0 = arith.constant 0 : index
    %0 = vector.load %arg1[%c0, %c0_0] : memref<2x128xf32, #tpu.memory_space<vmem>>, vector<2x128xf32>
    %c0_1 = arith.constant 0 : index
    %c0_2 = arith.constant 0 : index
    %1 = vector.load %arg2[%c0_1, %c0_2] : memref<16x2xf32, #tpu.memory_space<vmem>>, vector<16x2xf32>
    %2 = vector.extract_strided_slice %1 {offsets = [0, 0], sizes = [16, 1], strides = [1, 1]} : vector<16x2xf32> to vector<16x1xf32>
    %3 = vector.extract_strided_slice %0 {offsets = [0, 0], sizes = [1, 128], strides = [1, 1]} : vector<2x128xf32> to vector<1x128xf32>
    %4 = vector.broadcast %2 : vector<16x1xf32> to vector<16x128xf32>
    %5 = vector.broadcast %3 : vector<1x128xf32> to vector<16x128xf32>
    %6 = arith.mulf %4, %5 : vector<16x128xf32>
    %7 = vector.extract_strided_slice %1 {offsets = [0, 1], sizes = [16, 1], strides = [1, 1]} : vector<16x2xf32> to vector<16x1xf32>
    %8 = vector.extract_strided_slice %0 {offsets = [1, 0], sizes = [1, 128], strides = [1, 1]} : vector<2x128xf32> to vector<1x128xf32>
    %9 = vector.broadcast %7 : vector<16x1xf32> to vector<16x128xf32>
    %10 = vector.broadcast %8 : vector<1x128xf32> to vector<16x128xf32>
    %11 = arith.mulf %9, %10 : vector<16x128xf32>
    %12 = arith.addf %6, %11 : vector<16x128xf32>
    %c0_3 = arith.constant 0 : index
    %c0_4 = arith.constant 0 : index
    %13 = vector.load %arg3[%c0_3, %c0_4] : memref<16x1xf32, #tpu.memory_space<vmem>>, vector<16x1xf32>
    %14 = vector.broadcast %13 : vector<16x1xf32> to vector<16x128xf32>
    %15 = arith.addf %12, %14 : vector<16x128xf32>
    %cst = arith.constant 0.000000e+00 : f32
    %16 = vector.broadcast %cst : f32 to vector<16x128xf32>
    %17 = arith.maximumf %15, %16 : vector<16x128xf32>
    %c0_5 = arith.constant 0 : index
    %c0_6 = arith.constant 0 : index
    %18 = vector.load %arg4[%c0_5, %c0_6] : memref<16x1xf32, #tpu.memory_space<vmem>>, vector<16x1xf32>
    %19 = vector.broadcast %18 : vector<16x1xf32> to vector<16x128xf32>
    %20 = arith.mulf %19, %17 : vector<16x128xf32>
    %cst_7 = arith.constant dense<0.000000e+00> : vector<128xf32>
    %21 = vector.multi_reduction <add>, %20, %cst_7 [0] : vector<16x128xf32> to vector<128xf32>
    %22 = vector.shape_cast %21 : vector<128xf32> to vector<1x128xf32>
    %c0_8 = arith.constant 0 : index
    %c0_9 = arith.constant 0 : index
    %23 = vector.load %arg5[%c0_8, %c0_9] : memref<1x1xf32, #tpu.memory_space<vmem>>, vector<1x1xf32>
    %24 = vector.broadcast %23 : vector<1x1xf32> to vector<1x128xf32>
    %25 = arith.addf %22, %24 : vector<1x128xf32>
    %26 = arith.negf %25 : vector<1x128xf32>
    %27 = math.exp %26 : vector<1x128xf32>
    %cst_10 = arith.constant 1.000000e+00 : f32
    %28 = vector.broadcast %cst_10 : f32 to vector<1x128xf32>
    %29 = arith.addf %28, %27 : vector<1x128xf32>
    %30 = arith.divf %28, %29 : vector<1x128xf32>
    %c0_11 = arith.constant 0 : index
    %c0_12 = arith.constant 0 : index
    %31 = vector.load %arg6[%c0_11, %c0_12] : memref<1x128xf32, #tpu.memory_space<vmem>>, vector<1x128xf32>
    tpu.vector_store %arg6[%c0_11, %c0_12], %30 {strides = array<i32>} : memref<1x128xf32, #tpu.memory_space<vmem>>, vector<1x128xf32>,
    return
  }
  func.func @transform_0(%arg0: i32) -> (i32, i32) {
    %c0_i32 = arith.constant 0 : i32
    %c0_i32_0 = arith.constant 0 : i32
    return %c0_i32, %arg0 : i32, i32
  }
  func.func @transform_1(%arg0: i32) -> (i32, i32) {
    %c0_i32 = arith.constant 0 : i32
    %c0_i32_0 = arith.constant 0 : i32
    %c0_i32_1 = arith.constant 0 : i32
    return %c0_i32, %c0_i32_0 : i32, i32
  }
  func.func @transform_2(%arg0: i32) -> (i32, i32) {
    %c0_i32 = arith.constant 0 : i32
    %c0_i32_0 = arith.constant 0 : i32
    %c0_i32_1 = arith.constant 0 : i32
    return %c0_i32, %c0_i32_0 : i32, i32
  }
  func.func @transform_3(%arg0: i32) -> (i32, i32) {
    %c0_i32 = arith.constant 0 : i32
    %c0_i32_0 = arith.constant 0 : i32
    %c0_i32_1 = arith.constant 0 : i32
    return %c0_i32, %c0_i32_0 : i32, i32
  }
  func.func @transform_4(%arg0: i32) -> (i32, i32) {
    %c0_i32 = arith.constant 0 : i32
    %c0_i32_0 = arith.constant 0 : i32
    %c0_i32_1 = arith.constant 0 : i32
    return %c0_i32, %c0_i32_0 : i32, i32
  }
  func.func @transform_5(%arg0: i32) -> (i32, i32) {
    %c0_i32 = arith.constant 0 : i32
    %c0_i32_0 = arith.constant 0 : i32
    return %c0_i32, %arg0 : i32, i32
  }
}

</mosaic_0001>

<bundles_post_ra>
// kernel: mlp_forward.1
= control target key start
LH: loop header
LB: loop body
LE: loop exit
PB: predicated region body
PF: predicated region fallthrough
CT: control target
= control target key end

     0   :  { %v126_v0 = vmov 1   ;;  %v127_v1 = vmov 0   ;;  %v35_v10 = vlaneseq  ;;  %s185_s1 = inlined_call_operand.vmem [shape: f32[16,2], index: 1, kind: input, shape index: {}]   ;;  %s186_s4 = inlined_call_operand.<no memory space> [shape: f32[1,1], index: 4, kind: input, shape index: {}]   ;;  %s187_s2 = inlined_call_operand.vmem [shape: f32[16,1], index: 2, kind: input, shape index: {}]   ;;  %s188_s3 = inlined_call_operand.vmem [shape: f32[16,1], index: 3, kind: input, shape index: {}]   ;;  %s189_s0 = inlined_call_operand.vmem [shape: f32[2,128], index: 0, kind: input, shape index: {}]   ;;  %s190_s5 = inlined_call_operand.vmem [shape: f32[1,128], index: 5, kind: output, shape index: {}]  }
   0x1   :  { %120 = vset.pattern.permute.xlu1 %v126_v0  ;;  %119 = vset.pattern.permute.xlu0 %v127_v1  ;;  %v23_v2 = vld [vmem:[%s185_s1] sm:$0xff]  ;;  %v10_v3 = vstv %s186_s4  ;;  %v24_v4 = vld [vmem:[%s185_s1 + $0x8] sm:$0xff] }
   0x2   :  { %42 = vperm.xlu1 %120, %v23_v2   ;;  %27 = vperm.xlu0 %119, %v23_v2   ;;  %11 = vst [vmem:[#allocation2] sm:$0x1] %v10_v3  ;;  %v57_v5 = vld [vmem:[%s187_s2] sm:$0xff]  ;;  %v58_v6 = vld [vmem:[%s187_s2 + $0x8] sm:$0xff]  ;;  %v36_v11 = vshrl.u32 %v35_v10, 7 }
   0x3   :  { %v73_v7 = vld [vmem:[%s188_s3] sm:$0xff]  ;;  %v74_v8 = vld [vmem:[%s188_s3 + $0x8] sm:$0xff] }
   0x4   :  { %v51_v12 = vsub.s32 1, %v36_v11  ;;  %v37_v13 = vsub.s32 0, %v36_v11  ;;  %v22_v14 = vld [vmem:[%s189_s0] sm:$0x3] }
   0x6   :  { %46 = vperm.xlu1 %120, %v24_v4   ;;  %32 = vperm.xlu0 %119, %v24_v4   ;;  %v52_v15 = vrot.slane %v22_v14, %v51_v12  ;;  %v38_v16 = vrot.slane %v22_v14, %v37_v13 }
   0x9   :  { %v94_v9 = vld [vmem:[#allocation2] sm:$0x1] }
   0xa   :  { %121 = vset.pattern.permute.xlu1 %v127_v1  ;;  %61 = vperm.xlu0 %119, %v57_v5  }
   0xb   :  { %66 = vperm.xlu1 %121, %v58_v6  }
   0xe   :  { %77 = vperm.xlu0 %119, %v73_v7  }
   0xf   :  { %82 = vperm.xlu1 %121, %v74_v8  }
  0x12   :  { %97 = vperm.xlu0 %119, %v94_v9  }
  0x7d   :  { %v43_v17 = vpop.permute.xlu1 %42  ;;  %v28_v18 = vpop.permute.xlu0 %27 }
  0x7e   :  { %v53_v19 = vmul.f32 %v52_v15, %v43_v17  ;;  %v39_v20 = vmul.f32 %v38_v16, %v28_v18 }
  0x80   :  { %v55_v25 = vadd.f32 %v53_v19, %v39_v20 }
  0x81   :  { %v47_v21 = vpop.permute.xlu1 %46  ;;  %v33_v22 = vpop.permute.xlu0 %32 }
  0x82   :  { %v54_v23 = vmul.f32 %v52_v15, %v47_v21  ;;  %v40_v24 = vmul.f32 %v38_v16, %v33_v22 }
  0x84   :  { %v56_v26 = vadd.f32 %v54_v23, %v40_v24 }
  0x85   :  { %v62_v27 = vpop.permute.xlu0 %61 }
  0x86   :  { %v69_v28 = vadd.f32 %v62_v27, %v55_v25  ;;  %v67_v29 = vpop.permute.xlu1 %66 }
  0x87   :  { %v70_v30 = vadd.f32 %v67_v29, %v56_v26 }
  0x88   :  { %v71_v31 = vmax.f32 %v69_v28, 0.0 }
  0x89   :  { %v72_v32 = vmax.f32 %v70_v30, 0.0  ;;  %v78_v33 = vpop.permute.xlu0 %77 }
  0x8a   :  { %v85_v34 = vmul.f32 %v78_v33, %v71_v31  ;;  %v83_v35 = vpop.permute.xlu1 %82 }
  0x8b   :  { %v86_v36 = vmul.f32 %v83_v35, %v72_v32 }
  0x8d   :  { %v87_v37 = vadd.f32 %v86_v36, %v85_v34  ;;  %v98_v42 = vpop.permute.xlu0 %97 }
  0x8e   :  { %v103_v45 = vrot.slane %v98_v42, %v37_v13 }
  0x8f   :  { %v88_v38 = vrot.slane %v87_v37, 4 }
  0x91   :  { %v89_v39 = vadd.f32 %v88_v38, %v87_v37 }
  0x93   :  { %v90_v40 = vrot.slane %v89_v39, 2 }
  0x95   :  { %v91_v41 = vadd.f32 %v90_v40, %v89_v39 }
  0x97   :  { %v92_v43 = vrot.slane %v91_v41, 1 }
  0x99   :  { %v93_v44 = vadd.f32 %v92_v43, %v91_v41 }
  0x9b   :  { %v104_v46 = vadd.f32 %v103_v45, %v93_v44 }
  0x9d   :  { %v116_v47 = vmul.f32 -1.442695, %v104_v46 }
  0x9f   :  { %122 = vpow2.f32 %v116_v47 }
  0xac   :  { %v123_v48 = vpop.eup %122 }
  0xad   :  { %v108_v49 = vadd.f32 1.0, %v123_v48 }
  0xaf   :  { %124 = vrcp.f32 %v108_v49 }
  0xbc   :  { %v125_v50 = vpop.eup %124 }
  0xbd   :  { %111 = vst [vmem:[%s190_s5] sm:$0x1] %v125_v50 }

</bundles_post_ra>
